<compile_context>
chip_gen: v6e
topology: v6e:2x2x1
jax: 0.10.0
libtpu: 0.0.40
codegen_flags: <defaults>
</compile_context>

<pallas_src>
import functools

import jax
import jax.numpy as jnp
from jax.experimental import pallas as pl
from jax.experimental.pallas import tpu as pltpu

DP = 128        # padded width of hidden layers / inner matmul N dim (lanes)
IN_PAD = 16     # input features (10) rounded up to 16 lanes
OUT_PAD = 8     # output features (2) rounded up to 8 lanes
N_LAYERS = 3    # input -> 32 -> 32 -> output
WROWS = DP + 8  # 136 rows per layer: rows 0..127 = W (zero-padded), row 128 = bias


# ----------------------------- Pallas kernel --------------------------------
def _mlp_kernel(x_ref, p_ref, o_ref, *, use_bf16):
    # x_ref: (tile_b, IN_PAD)   p_ref: (3, 136, 128)   o_ref: (tile_b, OUT_PAD)
    h = x_ref[...]
    for l in range(N_LAYERS):                        # static unroll (3 layers)
        k = IN_PAD if l == 0 else DP                 # layer-0 contraction is 16
        w = p_ref[l, 0:k, :]                         # (k, 128) weight tile
        b = p_ref[l, DP:DP + 1, :]                   # (1, 128) bias row
        if use_bf16:
            h = jnp.dot(h.astype(jnp.bfloat16), w.astype(jnp.bfloat16),
                        preferred_element_type=jnp.float32)
        else:
            h = jnp.dot(h, w, preferred_element_type=jnp.float32)
        h = jnp.tanh(h + b)                          # bias + tanh in f32
    # Keep the last matmul at N=128; slice to the slim 8-lane output slab.
    o_ref[...] = h[:, :OUT_PAD].astype(o_ref.dtype)


# ------------------------------ wrapper --------------------------------------
def policy_forward(x, packed_params, out_size, tile_b=None, use_bf16_matmul=False):
    """Fused padded MLP forward.

    x:             (batch, input_size) float32, input_size <= 16
    packed_params: (3, 136, 128) float32 slab from pack_params()
    returns:       (batch, out_size) float32
    """
    batch, in_size = x.shape
    assert in_size <= IN_PAD, f"input_size {in_size} > {IN_PAD}"
    assert out_size <= OUT_PAD, f"output_size {out_size} > {OUT_PAD}"
    assert packed_params.shape == (N_LAYERS, WROWS, DP), packed_params.shape

    # Pad batch to a sublane multiple (>= 8) and choose a batch tile.
    b_pad = max(8, ((batch + 7) // 8) * 8)
    if tile_b is None:
        tile_b = min(b_pad, 2048)          # large tiles amortize ~0.35us/step
    tile_b = max(8, (tile_b // 8) * 8)
    # Guarantee >= 2 grid steps when the batch allows it (v7x megacore sharding
    # via dimension_semantics=("parallel",); no-op on v5e/v6e).
    tile_b = min(tile_b, max(8, ((b_pad // 2) // 8) * 8))
    b_pad = ((b_pad + tile_b - 1) // tile_b) * tile_b

    # Slim, lane-friendly input pad: only (b_pad, 16), not (b_pad, 128).
    x_pad = jnp.zeros((b_pad, IN_PAD), jnp.float32).at[:batch, :in_size].set(x)

    grid = (b_pad // tile_b,)

    cost = pl.CostEstimate(
        flops=2 * b_pad * (IN_PAD * DP + DP * DP + DP * DP),
        transcendentals=N_LAYERS * b_pad * DP,
        bytes_accessed=4 * (b_pad * IN_PAD + b_pad * OUT_PAD
                            + N_LAYERS * WROWS * DP),
    )

    kernel = functools.partial(_mlp_kernel, use_bf16=use_bf16_matmul)

    out_pad = pl.pallas_call(
        kernel,
        out_shape=jax.ShapeDtypeStruct((b_pad, OUT_PAD), jnp.float32),
        grid=grid,
        in_specs=[
            # streaming input tiles
            pl.BlockSpec((tile_b, IN_PAD), lambda i: (i, 0)),
            # resident params: constant index_map -> single buffer is enough
            pl.BlockSpec((N_LAYERS, WROWS, DP), lambda i: (0, 0, 0),
                         pipeline_mode=pl.Buffered(1)),
        ],
        out_specs=pl.BlockSpec((tile_b, OUT_PAD), lambda i: (i, 0)),
        compiler_params=pltpu.CompilerParams(
            dimension_semantics=("parallel",),
            vmem_limit_bytes=32 * 1024 * 1024),
        cost_estimate=cost,
    )(x_pad, packed_params)

    return out_pad[:batch, :out_size]


# --------------------------- parameter handling ------------------------------
def init_policy_params(key, input_size=10, output_size=2,
                       hidden_layers=(32, 32),
                       weight_init_lim=0.1, bias_init_lim=0.1):
    layer_sizes = [input_size] + list(hidden_layers) + [output_size]
    params = []
    for i in range(len(layer_sizes) - 1):
        key, kw, kb = jax.random.split(key, 3)
        fan_in, fan_out = layer_sizes[i], layer_sizes[i + 1]
        w = jax.random.uniform(kw, (fan_in, fan_out), jnp.float32,
                               minval=-weight_init_lim, maxval=weight_init_lim)
        b = jax.random.uniform(kb, (fan_out,), jnp.float32,
                               minval=-bias_init_lim, maxval=bias_init_lim)
        params.append((w, b))
    return params


def pack_params(params):
    """Pack [(W,b)]*3 into a single zero-padded (3, 136, 128) slab.

    Rows 0..fan_in-1 of each layer hold W; row 128 holds the bias. Every other
    entry MUST stay zero: padded lanes then remain at tanh(0) = 0 through all
    layers, which the kernel relies on for exactness.
    """
    assert len(params) == N_LAYERS
    slab = jnp.zeros((N_LAYERS, WROWS, DP), jnp.float32)
    for l, (w, b) in enumerate(params):
        fi, fo = w.shape
        assert fi <= DP and fo <= DP
        slab = slab.at[l, :fi, :fo].set(w)
        slab = slab.at[l, DP, :fo].set(b)
    return slab


# ------------------------------- reference -----------------------------------
def policy_forward_ref(x, params):
    h = x
    for (w, b) in params:
        h = jnp.tanh(h @ w + b)
    return h


if __name__ == "__main__":
    key = jax.random.PRNGKey(0)
    key, kx, kx2 = jax.random.split(key, 3)

    batch, input_size, output_size = 2, 10, 2
    x = jax.random.normal(kx, (batch, input_size), dtype=jnp.float32)

    params = init_policy_params(key, input_size=input_size, output_size=output_size)
    packed = pack_params(params)

    out = policy_forward(x, packed, out_size=output_size)
    out = jax.block_until_ready(out)

    ref = policy_forward_ref(x, params)
    assert out.shape == (batch, output_size), out.shape
    assert jnp.allclose(out, ref, atol=1e-5, rtol=1e-5), (out, ref)

    # Multi-tile path (grid >= 2, batch not a multiple of the tile) check.
    batch2 = 300
    x2 = jax.random.normal(kx2, (batch2, input_size), dtype=jnp.float32)
    out2 = jax.block_until_ready(policy_forward(x2, packed, out_size=output_size))
    ref2 = policy_forward_ref(x2, params)
    assert out2.shape == (batch2, output_size), out2.shape
    assert jnp.allclose(out2, ref2, atol=1e-5, rtol=1e-5)

    print("KERNEL_OK")
</pallas_src>

<mosaic_0001>
module attributes {stable_mosaic.version = 11 : i64} {
  func.func @_mlp_kernel(%arg0: i32, %arg1: memref<8x16xf32, #tpu.memory_space<vmem>>, %arg2: memref<3x136x128xf32, #tpu.memory_space<vmem>>, %arg3: memref<8x8xf32, #tpu.memory_space<vmem>>) attributes {dimension_semantics = [#tpu.dimension_semantics<parallel>], iteration_bounds = array<i64: 1>, scalar_prefetch = 0 : i64, scratch_operands = 0 : i64, tpu.core_type = #tpu.core_type<tc>, window_params = [{transform_indices = @transform_0, window_bounds = array<i64: 8, 16>}, {pipeline_mode = #tpu.pipeline_mode<synchronous>, transform_indices = @transform_1, window_bounds = array<i64: 3, 136, 128>}, {transform_indices = @transform_2, window_bounds = array<i64: 8, 8>}]} {
    %c0 = arith.constant 0 : index
    %c0_0 = arith.constant 0 : index
    %0 = vector.load %arg1[%c0, %c0_0] : memref<8x16xf32, #tpu.memory_space<vmem>>, vector<8x16xf32>
    %c0_1 = arith.constant 0 : index
    %c0_2 = arith.constant 0 : index
    %c0_3 = arith.constant 0 : index
    %1 = vector.load %arg2[%c0_1, %c0_2, %c0_3] : memref<3x136x128xf32, #tpu.memory_space<vmem>>, vector<1x16x128xf32>
    %2 = vector.shape_cast %1 : vector<1x16x128xf32> to vector<16x128xf32>
    %c0_4 = arith.constant 0 : index
    %c128 = arith.constant 128 : index
    %c0_5 = arith.constant 0 : index
    %3 = vector.load %arg2[%c0_4, %c128, %c0_5] : memref<3x136x128xf32, #tpu.memory_space<vmem>>, vector<1x1x128xf32>
    %4 = vector.shape_cast %3 : vector<1x1x128xf32> to vector<1x128xf32>
    %cst = arith.constant dense<0.000000e+00> : vector<8x128xf32>
    %5 = tpu.matmul %0, %2, %cst {dimension_numbers = #tpu.dot_dimension_numbers<[1], [0], [0], [1], [0, 0, 1, 1], [], []>} : vector<8x16xf32>, vector<16x128xf32>, vector<8x128xf32> -> vector<8x128xf32>
    %6 = vector.broadcast %4 : vector<1x128xf32> to vector<8x128xf32>
    %7 = arith.addf %5, %6 : vector<8x128xf32>
    %8 = math.tanh %7 : vector<8x128xf32>
    %c1 = arith.constant 1 : index
    %c0_6 = arith.constant 0 : index
    %c0_7 = arith.constant 0 : index
    %9 = vector.load %arg2[%c1, %c0_6, %c0_7] : memref<3x136x128xf32, #tpu.memory_space<vmem>>, vector<1x128x128xf32>
    %10 = vector.shape_cast %9 : vector<1x128x128xf32> to vector<128x128xf32>
    %c1_8 = arith.constant 1 : index
    %c128_9 = arith.constant 128 : index
    %c0_10 = arith.constant 0 : index
    %11 = vector.load %arg2[%c1_8, %c128_9, %c0_10] : memref<3x136x128xf32, #tpu.memory_space<vmem>>, vector<1x1x128xf32>
    %12 = vector.shape_cast %11 : vector<1x1x128xf32> to vector<1x128xf32>
    %cst_11 = arith.constant dense<0.000000e+00> : vector<8x128xf32>
    %13 = tpu.matmul %8, %10, %cst_11 {dimension_numbers = #tpu.dot_dimension_numbers<[1], [0], [0], [1], [0, 0, 1, 1], [], []>} : vector<8x128xf32>, vector<128x128xf32>, vector<8x128xf32> -> vector<8x128xf32>
    %14 = vector.broadcast %12 : vector<1x128xf32> to vector<8x128xf32>
    %15 = arith.addf %13, %14 : vector<8x128xf32>
    %16 = math.tanh %15 : vector<8x128xf32>
    %c2 = arith.constant 2 : index
    %c0_12 = arith.constant 0 : index
    %c0_13 = arith.constant 0 : index
    %17 = vector.load %arg2[%c2, %c0_12, %c0_13] : memref<3x136x128xf32, #tpu.memory_space<vmem>>, vector<1x128x128xf32>
    %18 = vector.shape_cast %17 : vector<1x128x128xf32> to vector<128x128xf32>
    %c2_14 = arith.constant 2 : index
    %c128_15 = arith.constant 128 : index
    %c0_16 = arith.constant 0 : index
    %19 = vector.load %arg2[%c2_14, %c128_15, %c0_16] : memref<3x136x128xf32, #tpu.memory_space<vmem>>, vector<1x1x128xf32>
    %20 = vector.shape_cast %19 : vector<1x1x128xf32> to vector<1x128xf32>
    %cst_17 = arith.constant dense<0.000000e+00> : vector<8x128xf32>
    %21 = tpu.matmul %16, %18, %cst_17 {dimension_numbers = #tpu.dot_dimension_numbers<[1], [0], [0], [1], [0, 0, 1, 1], [], []>} : vector<8x128xf32>, vector<128x128xf32>, vector<8x128xf32> -> vector<8x128xf32>
    %22 = vector.broadcast %20 : vector<1x128xf32> to vector<8x128xf32>
    %23 = arith.addf %21, %22 : vector<8x128xf32>
    %24 = math.tanh %23 : vector<8x128xf32>
    %25 = vector.extract_strided_slice %24 {offsets = [0, 0], sizes = [8, 8], strides = [1, 1]} : vector<8x128xf32> to vector<8x8xf32>
    %c0_18 = arith.constant 0 : index
    %c0_19 = arith.constant 0 : index
    %26 = vector.load %arg3[%c0_18, %c0_19] : memref<8x8xf32, #tpu.memory_space<vmem>>, vector<8x8xf32>
    tpu.vector_store %arg3[%c0_18, %c0_19], %25 {strides = array<i32>} : memref<8x8xf32, #tpu.memory_space<vmem>>, vector<8x8xf32>,
    return
  }
  func.func @transform_0(%arg0: i32) -> (i32, i32) {
    %c0_i32 = arith.constant 0 : i32
    %c0_i32_0 = arith.constant 0 : i32
    return %arg0, %c0_i32 : i32, i32
  }
  func.func @transform_1(%arg0: i32) -> (i32, i32, i32) {
    %c0_i32 = arith.constant 0 : i32
    %c0_i32_0 = arith.constant 0 : i32
    %c0_i32_1 = arith.constant 0 : i32
    %c0_i32_2 = arith.constant 0 : i32
    return %c0_i32, %c0_i32_0, %c0_i32_1 : i32, i32, i32
  }
  func.func @transform_2(%arg0: i32) -> (i32, i32) {
    %c0_i32 = arith.constant 0 : i32
    %c0_i32_0 = arith.constant 0 : i32
    return %arg0, %c0_i32 : i32, i32
  }
}

</mosaic_0001>

<bundles_post_ra>
// kernel: tpu_custom_call.1
= control target key start
LH: loop header
LB: loop body
LE: loop exit
PB: predicated region body
PF: predicated region fallthrough
CT: control target
= control target key end

     0   :  { %7 = vsyncpa [#allocation3], 0  ;;  %s593_s0 = inlined_call_operand.hbm [shape: f32[8,16], index: 0, kind: input, shape index: {}]   ;;  %s594_s1 = inlined_call_operand.hbm [shape: f32[3,136,128], index: 1, kind: input, shape index: {}]   ;;  %s595_s2 = inlined_call_operand.hbm [shape: f32[8,8], index: 2, kind: output, shape index: {}]  }
   0x1   :  { %8 = vsyncpa [#allocation6], 0 }
   0x2   :  { %9 = vsyncpa [#allocation4], 0  ;;  %s522_s9 = smov [#allocation2]   ;;  %s523_s11 = smov [#allocation5]  }
   0x3   :  { %s16_s10 = sshll.u32 %s522_s9, 4  ;;  %s25_s12 = sshll.u32 %s523_s11, 4  ;;  %s17_s10 = int_to_ptr.vmem [resolvable:$true] %s16_s10  ;;  %s26_s12 = int_to_ptr.vmem [resolvable:$true] %s25_s12 }
   0x4   :  { %s464_s13 = scalar_lea.vmem %s17_s10, 128  ;;  %p469_p1 = scmp.lt.s32.totalorder %s17_s10, %s17_s10 }
   0x5   :  { %p465_p0 = scmp.ne.s32.totalorder %s17_s10, %s464_s13  ;;  %p470_p2 = scmp.lt.s32.totalorder %s464_s13, %s464_s13 }
   0x7   :  { %p471_p3 = por %p470_p2, %p469_p1 }
   0x9   :  { %p472_p4 = pnand %p471_p3, %p465_p0 }
   0xb   :  { %475 = shalt.err (!%p472_p4)
}
   0xc   :  { %19 = dma.hbm_to_vmem [thread:$0]  %s593_s0, 128, %s17_s10, [#allocation3]  }
   0xd   :  { %s484_s16 = scalar_lea.vmem %s26_s12, 6528  ;;  %p489_p6 = scmp.lt.s32.totalorder %s26_s12, %s26_s12 }
   0xe   :  { %p485_p5 = scmp.ne.s32.totalorder %s26_s12, %s484_s16  ;;  %p490_p7 = scmp.lt.s32.totalorder %s484_s16, %s484_s16 }
  0x10   :  { %p491_p8 = por %p490_p7, %p489_p6 }
  0x12   :  { %p492_p9 = pnand %p491_p8, %p485_p5 }
  0x14   :  { %495 = shalt.err (!%p492_p9)
}
  0x15   :  { %s524_s17 = smov 128   ;;  %s525_s18 = smov 8  }
  0x16   :  { %31 = dma.hbm_to_vmem [thread:$0]  %s594_s1, 6528, %s26_s12, [#allocation6], %s524_s17, %s524_s17, %s525_s18  }
  0x17   :  { %516 = dma.done.wait [#allocation3], 128  }
  0x18   :  { %517 = vsyncadd [#allocation3], 4294967168 }
  0x19   :  { %518 = dma.done.wait [#allocation6], 6528  }
  0x1a   :  { %519 = vsyncadd [#allocation6], 4294960768  ;;  %v526_v0 = vmov 0.0   ;;  %vm527_vm0 = vmmov 0   ;;  %v40_v1 = vld [vmem:[#allocation5 + $0x8] sm:$0xff]  ;;  %v39_v2 = vld [vmem:[#allocation5] sm:$0xff] }
  0x1b   :  { %366 = vmatprep.subr.mxu0 %v526_v0  ;;  %370 = vmatprep.mubr.msk.f32.mxu0 %vm527_vm0, %v526_v0  ;;  %v38_v3 = vld [vmem:[#allocation2] sm:$0xff]  ;;  %vm46_vm1 = vcmask 130048   ;;  %v137_v4 = vld [vmem:[#allocation5 + $0x100] sm:$0xff]  ;;  %v135_v6 = vld [vmem:[#allocation5 + $0xf0] sm:$0xff]  ;;  %s528_s0 = smov [#allocation7]   ;;  %vm307_vm2 = vcmask 64512  }
  0x1c   :  { %373 = vmatprep.subr.mxu1 %v526_v0  ;;  %405 = vmatprep.mubr.msk.f32.mxu1 %vm527_vm0, %v526_v0  ;;  %v136_v5 = vld [vmem:[#allocation5 + $0xf8] sm:$0xff]  ;;  %v134_v7 = vld [vmem:[#allocation5 + $0xe8] sm:$0xff]  ;;  %v133_v8 = vld [vmem:[#allocation5 + $0xe0] sm:$0xff]  ;;  %s315_s1 = sshll.u32 %s528_s0, 4  ;;  %s316_s1 = int_to_ptr.vmem [resolvable:$true] %s315_s1 }
  0x1d   :  { %367 = vmatpush3.msra.mxu0 %v40_v1  ;;  %374 = vmatpush3.msra.mxu1 %v137_v4  ;;  %v132_v9 = vld [vmem:[#allocation5 + $0xd8] sm:$0xff]  ;;  %v131_v10 = vld [vmem:[#allocation5 + $0xd0] sm:$0xff]  ;;  %v130_v11 = vld [vmem:[#allocation5 + $0xc8] sm:$0xff]  ;;  %s496_s21 = scalar_lea.vmem %s316_s1, 128  ;;  %p501_p11 = scmp.lt.s32.totalorder %s316_s1, %s316_s1 }
  0x1e   :  { %368 = vmatprep.subr.mxu0 %v526_v0  ;;  %375 = vmatprep.subr.mxu1 %v526_v0  ;;  %v129_v12 = vld [vmem:[#allocation5 + $0xc0] sm:$0xff]  ;;  %v128_v13 = vld [vmem:[#allocation5 + $0xb8] sm:$0xff]  ;;  %v127_v14 = vld [vmem:[#allocation5 + $0xb0] sm:$0xff]  ;;  %p497_p10 = scmp.ne.s32.totalorder %s316_s1, %s496_s21  ;;  %p502_p12 = scmp.lt.s32.totalorder %s496_s21, %s496_s21 }
  0x1f   :  { %369 = vmatpush3.msra.mxu0 %v39_v2  ;;  %376 = vmatpush3.msra.mxu1 %v136_v5  ;;  %v126_v15 = vld [vmem:[#allocation5 + $0xa8] sm:$0xff]  ;;  %v125_v16 = vld [vmem:[#allocation5 + $0xa0] sm:$0xff]  ;;  %v124_v17 = vld [vmem:[#allocation5 + $0x98] sm:$0xff] }
  0x20   :  { %371 = vmatmul.mubr.msk.f32.vlgmr.msra.gmra.mxu0 %vm46_vm1, %v38_v3  ;;  %377 = vmatprep.subr.mxu1 %v526_v0  ;;  %v123_v18 = vld [vmem:[#allocation5 + $0x90] sm:$0xff]  ;;  %v122_v19 = vld [vmem:[#allocation5 + $0x88] sm:$0xff]  ;;  %v229_v21 = vld [vmem:[#allocation5 + $0x180] sm:$0xff]  ;;  %p503_p13 = por %p502_p12, %p501_p11 }
  0x21   :  { %408 = vmatprep.subr.mxu0 %v526_v0  ;;  %378 = vmatpush3.msra.mxu1 %v135_v6  ;;  %v230_v20 = vld [vmem:[#allocation5 + $0x188] sm:$0xff]  ;;  %v228_v22 = vld [vmem:[#allocation5 + $0x178] sm:$0xff]  ;;  %v227_v23 = vld [vmem:[#allocation5 + $0x170] sm:$0xff] }
  0x22   :  { %440 = vmatprep.mubr.msk.f32.mxu0 %vm527_vm0, %v526_v0  ;;  %379 = vmatprep.subr.mxu1 %v526_v0  ;;  %v226_v24 = vld [vmem:[#allocation5 + $0x168] sm:$0xff]  ;;  %v225_v25 = vld [vmem:[#allocation5 + $0x160] sm:$0xff]  ;;  %v224_v26 = vld [vmem:[#allocation5 + $0x158] sm:$0xff]  ;;  %p504_p0 = pnand %p503_p13, %p497_p10 }
  0x23   :  { %380 = vmatpush3.msra.mxu1 %v134_v7  ;;  %409 = vmatpush3.msra.mxu0 %v230_v20  ;;  %v325_v27 = vld [vmem:[#allocation5 + $0x80] ss:$0 sm:$0xff]  ;;  %v223_v32 = vld [vmem:[#allocation5 + $0x150] sm:$0xff]  ;;  %v222_v33 = vld [vmem:[#allocation5 + $0x148] sm:$0xff] }
  0x24   :  { %381 = vmatprep.subr.mxu1 %v526_v0  ;;  %410 = vmatprep.subr.mxu0 %v526_v0  ;;  %v221_v34 = vld [vmem:[#allocation5 + $0x140] sm:$0xff]  ;;  %v220_v35 = vld [vmem:[#allocation5 + $0x138] sm:$0xff]  ;;  %v219_v36 = vld [vmem:[#allocation5 + $0x130] sm:$0xff] }
  0x25   :  { %382 = vmatpush3.msra.mxu1 %v133_v8  ;;  %411 = vmatpush3.msra.mxu0 %v229_v21  ;;  %v218_v37 = vld [vmem:[#allocation5 + $0x128] sm:$0xff]  ;;  %v217_v38 = vld [vmem:[#allocation5 + $0x120] sm:$0xff]  ;;  %v216_v39 = vld [vmem:[#allocation5 + $0x118] sm:$0xff] }
  0x26   :  { %383 = vmatprep.subr.mxu1 %v526_v0  ;;  %412 = vmatprep.subr.mxu0 %v526_v0  ;;  %v215_v40 = vld [vmem:[#allocation5 + $0x110] sm:$0xff]  ;;  %v327_v41 = vld [vmem:[#allocation5 + $0x108] ss:$0 sm:$0xff] }
  0x27   :  { %384 = vmatpush3.msra.mxu1 %v132_v9  ;;  %413 = vmatpush3.msra.mxu0 %v228_v22  ;;  %v328_v46 = vld [vmem:[#allocation5 + $0x190] ss:$0 sm:$0xff] }
  0x28   :  { %385 = vmatprep.subr.mxu1 %v526_v0  ;;  %414 = vmatprep.subr.mxu0 %v526_v0 }
  0x29   :  { %386 = vmatpush3.msra.mxu1 %v131_v10  ;;  %415 = vmatpush3.msra.mxu0 %v227_v23 }
  0x2a   :  { %387 = vmatprep.subr.mxu1 %v526_v0  ;;  %416 = vmatprep.subr.mxu0 %v526_v0 }
  0x2b   :  { %388 = vmatpush3.msra.mxu1 %v130_v11  ;;  %417 = vmatpush3.msra.mxu0 %v226_v24 }
  0x2c   :  { %389 = vmatprep.subr.mxu1 %v526_v0  ;;  %418 = vmatprep.subr.mxu0 %v526_v0 }
  0x2d   :  { %390 = vmatpush3.msra.mxu1 %v129_v12  ;;  %419 = vmatpush3.msra.mxu0 %v225_v25 }
  0x2e   :  { %391 = vmatprep.subr.mxu1 %v526_v0  ;;  %420 = vmatprep.subr.mxu0 %v526_v0 }
  0x2f   :  { %392 = vmatpush3.msra.mxu1 %v128_v13  ;;  %421 = vmatpush3.msra.mxu0 %v224_v26 }
  0x30   :  { %393 = vmatprep.subr.mxu1 %v526_v0  ;;  %422 = vmatprep.subr.mxu0 %v526_v0 }
  0x31   :  { %394 = vmatpush3.msra.mxu1 %v127_v14  ;;  %423 = vmatpush3.msra.mxu0 %v223_v32 }
  0x32   :  { %395 = vmatprep.subr.mxu1 %v526_v0  ;;  %424 = vmatprep.subr.mxu0 %v526_v0 }
  0x33   :  { %396 = vmatpush3.msra.mxu1 %v126_v15  ;;  %425 = vmatpush3.msra.mxu0 %v222_v33 }
  0x34   :  { %397 = vmatprep.subr.mxu1 %v526_v0  ;;  %426 = vmatprep.subr.mxu0 %v526_v0 }
  0x35   :  { %398 = vmatpush3.msra.mxu1 %v125_v16  ;;  %427 = vmatpush3.msra.mxu0 %v221_v34 }
  0x36   :  { %399 = vmatprep.subr.mxu1 %v526_v0  ;;  %428 = vmatprep.subr.mxu0 %v526_v0 }
  0x37   :  { %400 = vmatpush3.msra.mxu1 %v124_v17  ;;  %429 = vmatpush3.msra.mxu0 %v220_v35 }
  0x38   :  { %401 = vmatprep.subr.mxu1 %v526_v0  ;;  %430 = vmatprep.subr.mxu0 %v526_v0 }
  0x39   :  { %402 = vmatpush3.msra.mxu1 %v123_v18  ;;  %431 = vmatpush3.msra.mxu0 %v219_v36 }
  0x3a   :  { %403 = vmatprep.subr.mxu1 %v526_v0  ;;  %432 = vmatprep.subr.mxu0 %v526_v0 }
  0x3b   :  { %404 = vmatpush3.msra.mxu1 %v122_v19  ;;  %433 = vmatpush3.msra.mxu0 %v218_v37 }
  0x3c   :  { %434 = vmatprep.subr.mxu0 %v526_v0 }
  0x3d   :  { %435 = vmatpush3.msra.mxu0 %v217_v38 }
  0x3e   :  { %436 = vmatprep.subr.mxu0 %v526_v0 }
  0x3f   :  { %437 = vmatpush3.msra.mxu0 %v216_v39 }
  0x40   :  { %438 = vmatprep.subr.mxu0 %v526_v0 }
  0x41   :  { %439 = vmatpush3.msra.mxu0 %v215_v40 }
  0xe0   :  { %v116_v28 = vpop.f32.mrf.mxu0 }
  0xe1   :  { %v117_v29 = vadd.f32 %v325_v27, %v116_v28 }
  0xe2   :  { %v372_v30 = vpop.f32.mrf.mxu0 }
  0xe3   :  { %450 = vtanh.f32 %v117_v29 }
  0xf0   :  { %v451_v31 = vpop.eup %450 }
  0xf1   :  { %406 = vmatmul.mubr.f32.vlgmr.msra.gmra.mxu1 %v451_v31 }
 0x1b1   :  { %v209_v42 = vpop.f32.mrf.mxu1 }
 0x1b2   :  { %v210_v43 = vadd.f32 %v327_v41, %v209_v42 }
 0x1b3   :  { %v407_v44 = vpop.f32.mrf.mxu1 }
 0x1b4   :  { %452 = vtanh.f32 %v210_v43 }
 0x1c1   :  { %v453_v45 = vpop.eup %452 }
 0x1c2   :  { %441 = vmatmul.mubr.f32.vlgmr.msra.gmra.mxu0 %v453_v45 }
 0x282   :  { %v302_v47 = vpop.f32.mrf.mxu0 }
 0x283   :  { %v303_v48 = vadd.f32 %v328_v46, %v302_v47 }
 0x284   :  { %v442_v49 = vpop.f32.mrf.mxu0 }
 0x285   :  { %454 = vtanh.f32 %v303_v48 }
 0x292   :  { %v455_v50 = vpop.eup %454 }
 0x293   :  { %308 = vst.msk [vmem:[#allocation7] sm:$0xff] %vm307_vm2, %v455_v50 }
 0x294   :  { %507 = shalt.err (!%p504_p0)
}
 0x295   :  { %318 = dma.vmem_to_hbm [thread:$0]  %s316_s1, 128, %s595_s2, [#allocation4]  }
 0x296   :  { %520 = dma.done.wait [#allocation4], 128  }
 0x297   :  { %521 = vsyncadd [#allocation4], 4294967168 }
 0x298   :  { %322 = vsyncpa [#allocation3], 1 }
 0x299   :  { %323 = vsyncpa [#allocation6], 1 }
 0x29a   :  { %324 = vsyncpa [#allocation4], 1 }

</bundles_post_ra>
